<compile_context>
chip_gen: v6e
topology: v6e:2x2x1
jax: 0.10.0
libtpu: 0.0.40
codegen_flags: <defaults>
</compile_context>

<pallas_src>
import numpy as np
import jax
import jax.numpy as jnp
from jax.experimental import pallas as pl
from jax.experimental.pallas import tpu as pltpu


def make_positional_encoding(seq_len, dim_model):
    """Exact mirror of the PyTorch module's PE-table construction."""
    pe = np.array(
        [[pos / 10000 ** (2 * i / dim_model) for i in range(1, dim_model + 1)]
         for pos in range(1, seq_len + 1)],
        dtype=np.float64,
    )
    pe[:, 0::2] = np.sin(pe[:, 0::2])
    pe[:, 1::2] = np.cos(pe[:, 1::2])
    return jnp.asarray(pe, dtype=jnp.float32)


def pe_add_kernel(x_ref, pe_ref, o_ref):
    # x_ref: (tb, S*D), pe_ref: (1, S*D) -> broadcast add over batch rows.
    o_ref[...] = x_ref[...] + pe_ref[...]
    # TODO(synk): nn.Dropout(p=0.5) omitted (eval-mode identity).


def positional_encoding_forward(x, pe, *, max_block_bytes=8 * 1024 * 1024):
    """x: (B, S, D); pe: (S, D). Returns x + pe broadcast over batch."""
    B, S, D = x.shape
    assert pe.shape == (S, D), "pe must be (seq_len, dim_model)"
    SD = S * D

    # Lane-dense 2-D views (contiguous reshapes, no data movement).
    x2 = x.reshape(B, SD)
    pe2 = pe.reshape(1, SD).astype(x.dtype)

    # Pick a batch-row tile: whole tensor if it fits comfortably in VMEM,
    # otherwise a multiple-of-8 row block (sublane aligned), grid over rows.
    row_bytes = SD * x.dtype.itemsize
    if B * row_bytes <= max_block_bytes:
        tb = B
    else:
        tb = max(8, (max_block_bytes // row_bytes) // 8 * 8)
        tb = min(tb, B)
    grid = (pl.cdiv(B, tb),)

    out2 = pl.pallas_call(
        pe_add_kernel,
        out_shape=jax.ShapeDtypeStruct((B, SD), x.dtype),
        grid_spec=pltpu.PrefetchScalarGridSpec(
            num_scalar_prefetch=0,
            grid=grid,
            in_specs=[
                pl.BlockSpec((tb, SD), lambda i: (i, 0)),   # x rows
                pl.BlockSpec((1, SD), lambda i: (0, 0)),    # PE row (resident)
            ],
            out_specs=pl.BlockSpec((tb, SD), lambda i: (i, 0)),
        ),
        compiler_params=pltpu.CompilerParams(
            dimension_semantics=("parallel",),
        ),
    )(x2, pe2)

    return out2.reshape(B, S, D)


def positional_encoding_reference(x, pe):
    """Pure-JAX reference mirroring the PyTorch forward (eval mode)."""
    return x + pe[None, :, :]


if __name__ == "__main__":
    key = jax.random.PRNGKey(0)

    batch, seq_len, dim_model = 2, 8, 40
    x = jax.random.normal(key, (batch, seq_len, dim_model), jnp.float32)
    pe = make_positional_encoding(seq_len, dim_model)

    out = positional_encoding_forward(x, pe)
    out = jax.block_until_ready(out)

    ref = positional_encoding_reference(x, pe)
    assert out.shape == (batch, seq_len, dim_model)
    assert jnp.allclose(out, ref, atol=1e-6, rtol=1e-6), "mismatch vs reference"

    print("KERNEL_OK")
</pallas_src>

<mosaic_0001>
module attributes {stable_mosaic.version = 11 : i64} {
  func.func @pe_add_kernel(%arg0: i32, %arg1: memref<2x320xf32, #tpu.memory_space<vmem>>, %arg2: memref<1x320xf32, #tpu.memory_space<vmem>>, %arg3: memref<2x320xf32, #tpu.memory_space<vmem>>) attributes {dimension_semantics = [#tpu.dimension_semantics<parallel>], iteration_bounds = array<i64: 1>, scalar_prefetch = 0 : i64, scratch_operands = 0 : i64, tpu.core_type = #tpu.core_type<tc>, window_params = [{transform_indices = @transform_0, window_bounds = array<i64: 2, 320>}, {pipeline_mode = #tpu.pipeline_mode<synchronous>, transform_indices = @transform_1, window_bounds = array<i64: 1, 320>}, {transform_indices = @transform_2, window_bounds = array<i64: 2, 320>}]} {
    %c0 = arith.constant 0 : index
    %c0_0 = arith.constant 0 : index
    %0 = vector.load %arg1[%c0, %c0_0] : memref<2x320xf32, #tpu.memory_space<vmem>>, vector<2x320xf32>
    %c0_1 = arith.constant 0 : index
    %c0_2 = arith.constant 0 : index
    %1 = vector.load %arg2[%c0_1, %c0_2] : memref<1x320xf32, #tpu.memory_space<vmem>>, vector<1x320xf32>
    %2 = vector.broadcast %1 : vector<1x320xf32> to vector<2x320xf32>
    %3 = arith.addf %0, %2 : vector<2x320xf32>
    %c0_3 = arith.constant 0 : index
    %c0_4 = arith.constant 0 : index
    %4 = vector.load %arg3[%c0_3, %c0_4] : memref<2x320xf32, #tpu.memory_space<vmem>>, vector<2x320xf32>
    tpu.vector_store %arg3[%c0_3, %c0_4], %3 {strides = array<i32>} : memref<2x320xf32, #tpu.memory_space<vmem>>, vector<2x320xf32>,
    return
  }
  func.func @transform_0(%arg0: i32) -> (i32, i32) {
    %c0_i32 = arith.constant 0 : i32
    %c0_i32_0 = arith.constant 0 : i32
    return %arg0, %c0_i32 : i32, i32
  }
  func.func @transform_1(%arg0: i32) -> (i32, i32) {
    %c0_i32 = arith.constant 0 : i32
    %c0_i32_0 = arith.constant 0 : i32
    %c0_i32_1 = arith.constant 0 : i32
    return %c0_i32, %c0_i32_0 : i32, i32
  }
  func.func @transform_2(%arg0: i32) -> (i32, i32) {
    %c0_i32 = arith.constant 0 : i32
    %c0_i32_0 = arith.constant 0 : i32
    return %arg0, %c0_i32 : i32, i32
  }
}

</mosaic_0001>

<bundles_post_ra>
// kernel: tpu_custom_call.1
= control target key start
LH: loop header
LB: loop body
LE: loop exit
PB: predicated region body
PF: predicated region fallthrough
CT: control target
= control target key end

     0   :  { %7 = vsyncpa [#allocation3], 0  ;;  %s189_s0 = inlined_call_operand.hbm [shape: f32[2,320], index: 0, kind: input, shape index: {}]   ;;  %s190_s1 = inlined_call_operand.hbm [shape: f32[1,320], index: 1, kind: input, shape index: {}]   ;;  %s191_s2 = inlined_call_operand.hbm [shape: f32[2,320], index: 2, kind: output, shape index: {}]  }
   0x1   :  { %8 = vsyncpa [#allocation6], 0 }
   0x2   :  { %9 = vsyncpa [#allocation4], 0  ;;  %s161_s9 = smov [#allocation2]   ;;  %s162_s11 = smov [#allocation5]  }
   0x3   :  { %s16_s10 = sshll.u32 %s161_s9, 4  ;;  %s26_s12 = sshll.u32 %s162_s11, 4  ;;  %s17_s10 = int_to_ptr.vmem [resolvable:$true] %s16_s10  ;;  %s27_s12 = int_to_ptr.vmem [resolvable:$true] %s26_s12 }
   0x4   :  { %s103_s13 = scalar_lea.vmem %s17_s10, 96  ;;  %p108_p1 = scmp.lt.s32.totalorder %s17_s10, %s17_s10 }
   0x5   :  { %p104_p0 = scmp.ne.s32.totalorder %s17_s10, %s103_s13  ;;  %p109_p2 = scmp.lt.s32.totalorder %s103_s13, %s103_s13 }
   0x7   :  { %p110_p3 = por %p109_p2, %p108_p1 }
   0x9   :  { %p111_p4 = pnand %p110_p3, %p104_p0 }
   0xb   :  { %114 = shalt.err (!%p111_p4)
}
   0xc   :  { %19 = dma.hbm_to_vmem [thread:$0]  %s189_s0, 96, %s17_s10, [#allocation3]  }
   0xd   :  { %s123_s16 = scalar_lea.vmem %s27_s12, 48  ;;  %s127_s17 = scalar_lea.vmem %s27_s12, 64 }
   0xe   :  { %p124_p5 = scmp.ne.s32.totalorder %s27_s12, %s123_s16  ;;  %p128_p6 = scmp.lt.s32.totalorder %s27_s12, %s27_s12 }
   0xf   :  { %p129_p7 = scmp.lt.s32.totalorder %s127_s17, %s123_s16 }
  0x11   :  { %p130_p8 = por %p129_p7, %p128_p6 }
  0x13   :  { %p131_p9 = pnand %p130_p8, %p124_p5 }
  0x15   :  { %134 = shalt.err (!%p131_p9)
}
  0x16   :  { %29 = dma.hbm_to_vmem [thread:$0]  %s190_s1, 48, %s27_s12, [#allocation6]  }
  0x17   :  { %155 = dma.done.wait [#allocation3], 96  }
  0x18   :  { %156 = vsyncadd [#allocation3], 4294967200 }
  0x19   :  { %157 = dma.done.wait [#allocation6], 48  }
  0x1a   :  { %158 = vsyncadd [#allocation6], 4294967248  ;;  %v39_v0 = vlaneseq  ;;  %v163_v1 = vmov 1983009808   ;;  %v37_v9 = vld [vmem:[#allocation5] sm:$0x7] }
  0x1b   :  { %v53_v2 = vunpack.c.l.s4 %v163_v1  ;;  %vm69_vm0 = vcmask 1041408   ;;  %vm70_vm1 = vcmask 1043458   ;;  %vm72_vm3 = vcmask 521220   ;;  %v36_v16 = vld [vmem:[#allocation2] sm:$0x3f]  ;;  %s164_s0 = smov [#allocation7]  }
  0x1c   :  { %v40_v3 = vshrl.u32 %v39_v0, 7  ;;  %vm71_vm2 = vmor %vm70_vm1, %vm69_vm0  ;;  %s81_s1 = sshll.u32 %s164_s0, 4  ;;  %s82_s1 = int_to_ptr.vmem [resolvable:$true] %s81_s1 }
  0x1d   :  { %v54_v4 = vunpack.c.0.s8 %v53_v2  ;;  %vm73_vm4 = vmor %vm72_vm3, %vm71_vm2  ;;  %s135_s20 = scalar_lea.vmem %s82_s1, 96  ;;  %p140_p11 = scmp.lt.s32.totalorder %s82_s1, %s82_s1 }
  0x1e   :  { %v41_v5 = vsub.s32 0, %v40_v3  ;;  %v45_v6 = vsub.s32 1, %v40_v3  ;;  %v49_v7 = vsub.s32 2, %v40_v3  ;;  %p136_p10 = scmp.ne.s32.totalorder %s82_s1, %s135_s20  ;;  %p141_p12 = scmp.lt.s32.totalorder %s135_s20, %s135_s20 }
  0x1f   :  { %v57_v8 = vsub.s32 %v54_v4, %v40_v3 }
  0x20   :  { %v42_v10 = vrot.slane %v37_v9, %v41_v5  ;;  %v46_v11 = vrot.slane %v37_v9, %v45_v6  ;;  %v50_v12 = vrot.slane %v37_v9, %v49_v7  ;;  %p142_p13 = por %p141_p12, %p140_p11 }
  0x22   :  { %v51_v13 = vcombine.low %v42_v10, %v46_v11  ;;  %v65_v14 = vrot.slane %v50_v12, %v57_v8  ;;  %p143_p0 = pnand %p142_p13, %p136_p10 }
  0x24   :  { %v58_v15 = vrot.slane %v51_v13, %v57_v8 }
  0x26   :  { %v66_v17 = vcombine.low %v58_v15, %v65_v14 }
  0x28   :  { %v68_v18 = vadd.f32 %v66_v17, %v36_v16 }
  0x2a   :  { %74 = vst.msk [vmem:[#allocation7] sm:$0x3f] %vm73_vm4, %v68_v18 }
  0x2b   :  { %146 = shalt.err (!%p143_p0)
}
  0x2c   :  { %84 = dma.vmem_to_hbm [thread:$0]  %s82_s1, 96, %s191_s2, [#allocation4]  }
  0x2d   :  { %159 = dma.done.wait [#allocation4], 96  }
  0x2e   :  { %160 = vsyncadd [#allocation4], 4294967200 }
  0x2f   :  { %88 = vsyncpa [#allocation3], 1 }
  0x30   :  { %89 = vsyncpa [#allocation6], 1 }
  0x31   :  { %90 = vsyncpa [#allocation4], 1 }

</bundles_post_ra>
